<compile_context>
chip_gen: v7x
topology: tpu7x:2x2x1
jax: 0.10.0
libtpu: 0.0.40
codegen_flags: <defaults>
</compile_context>

<pallas_src>
import jax
import jax.numpy as jnp
from jax.experimental import pallas as pl
from jax.experimental.pallas import tpu as pltpu


def attentive_gru1_kernel(logits_ref, ef_ref, x_ref,
                          rep_ref, w_e_ref, b_e_ref,
                          w_ctx_ref, w_x_ref, b_g_ref,
                          out_ref):
    f_p = out_ref.shape[1]                                 # padded GRU hidden width (128)

    # ---- edge softmax over incoming edges (one row = one destination node) ----
    logits = logits_ref[...]                               # (Rt, N); -1e30 where no edge
    row_max = jnp.max(logits, axis=1, keepdims=True)
    e = jnp.exp(logits - row_max)                          # exactly 0 on non-edges (underflow)
    denom = jnp.sum(e, axis=1, keepdims=True)              # >= 1 (every row has an edge)
    inv = pl.reciprocal(denom, approx=True)                # EUP slot
    inv = inv * (2.0 - denom * inv)                        # one Newton step -> ~f32 accuracy
    a = e * inv                                            # (Rt, N)

    # ---- weighted sum of raw edge features, fully lane-dense, no serial FMA chain ----
    # a_rep[:, u*Ef + j] = a[:, u]   via one tiny one-hot-block matmul (MXU, bf16 operands)
    a_rep = jnp.dot(a.astype(jnp.bfloat16), rep_ref[...],
                    preferred_element_type=jnp.float32)    # (Rt, N*Ef)
    w_ef = a_rep * ef_ref[...]                             # weighted edge feats, (Rt, N*Ef) f32

    # ---- factored edge Linear (Dropout = identity in eval) + message sum + ELU ----
    # sum_u a_vu * (ef_vu @ W + b) == (sum_u a_vu * ef_vu) @ W + b   (affine + sum_u a_vu = 1)
    # W_e is tiled N times vertically so the per-source sum is folded into one MXU dot.
    c = jnp.dot(w_ef.astype(jnp.bfloat16), w_e_ref[...],
                preferred_element_type=jnp.float32) + b_e_ref[...]
    context = jnp.where(c > 0, c, jnp.exp(c) - 1.0)        # ELU(alpha=1), (Rt, He_p)

    # ---- GRUCell(context, node_feats): all four gate matmuls fused into two MXU calls ----
    # column blocks of W_ctx / W_x:  [ r | z | gi_n | gh_n ]  (zero blocks where a gate does not
    # depend on that operand), biases pre-combined host-side.
    x = x_ref[...]                                         # (Rt, F_p) f32
    gates = (jnp.dot(context.astype(jnp.bfloat16), w_ctx_ref[...],
                     preferred_element_type=jnp.float32)
             + jnp.dot(x.astype(jnp.bfloat16), w_x_ref[...],
                       preferred_element_type=jnp.float32)
             + b_g_ref[...])                               # (Rt, 4*F_p)

    r = jax.nn.sigmoid(gates[:, 0:f_p])                    # 128-lane-group aligned slices
    z = jax.nn.sigmoid(gates[:, f_p:2 * f_p])
    gi_n = gates[:, 2 * f_p:3 * f_p]
    gh_n = gates[:, 3 * f_p:4 * f_p]
    n = jnp.tanh(gi_n + r * gh_n)
    h_new = (1.0 - z) * n + z * x

    out_ref[...] = jnp.maximum(h_new, 0.0)                 # lane-dense (Rt, F_p) store


def _round_up(x, m):
    return ((x + m - 1) // m) * m


def _pad_to(x, shape):
    return jnp.pad(x, [(0, t - s) for s, t in zip(x.shape, shape)])


def _pick_rows_per_step(R):
    # Prefer >= 8 grid steps (>= 4 per TensorCore under v7x 2-TC sharding) so per-TC
    # pipelining has work to overlap, while keeping row tiles reasonably sized.
    for rt in (256, 128, 64, 32, 16, 8):
        if R % rt == 0 and R // rt >= 8:
            return rt
    for rt in (256, 128, 64, 32, 16, 8):
        if R % rt == 0:
            return rt
    return 8


def attentive_gru1(edge_logits, adj_mask, edge_feats, node_feats, params, *, rows_per_step=None):
    B, N, F = node_feats.shape
    Ef = edge_feats.shape[-1]
    R = B * N
    if rows_per_step is None:
        rows_per_step = _pick_rows_per_step(R)
    Rt = rows_per_step
    assert R % Rt == 0 and Rt % 8 == 0
    # TODO(synk): ragged B*N (not a multiple of the row tile) would need host-side row padding.

    LANE = 128
    F_p = _round_up(F, LANE)
    He = params["w_e"].shape[1]
    He_p = _round_up(He, LANE)
    NEf = N * Ef

    bf16 = jnp.bfloat16

    # ---- host-side prep (cheap XLA ops) ----
    # Pre-mask logits (one array instead of logits + mask), flatten graphs to rows, make the
    # edge-feature layout lane-dense, zero-pad feature dims to 128-lane multiples, and build
    # the fused / tiled weight matrices (cast to bf16 for the MXU; biases stay f32).
    neg = jnp.float32(-1e30)
    logits_flat = jnp.where(adj_mask > 0, edge_logits, neg).reshape(R, N)
    ef_flat = edge_feats.reshape(R, NEf)                              # lane-dense (R, N*Ef)
    x_flat = _pad_to(node_feats.reshape(R, F), (R, F_p))

    # one-hot block expansion matrix: rep[u, u*Ef:(u+1)*Ef] = 1
    rep = jnp.repeat(jnp.eye(N, dtype=jnp.float32), Ef, axis=1).astype(bf16)      # (N, N*Ef)
    # edge Linear, tiled over sources so the per-source sum folds into one matmul
    w_e = jnp.tile(_pad_to(params["w_e"], (Ef, He_p)), (N, 1)).astype(bf16)       # (N*Ef, He_p)
    b_e = _pad_to(params["b_e"], (1, He_p))                                       # f32

    zero_blk = jnp.zeros((He_p, F_p), jnp.float32)
    w_ctx = jnp.concatenate([_pad_to(params["w_ir"], (He_p, F_p)),
                             _pad_to(params["w_iz"], (He_p, F_p)),
                             _pad_to(params["w_in"], (He_p, F_p)),
                             zero_blk], axis=1).astype(bf16)                      # (He_p, 4F_p)
    zero_blk_x = jnp.zeros((F_p, F_p), jnp.float32)
    w_x = jnp.concatenate([_pad_to(params["w_hr"], (F_p, F_p)),
                           _pad_to(params["w_hz"], (F_p, F_p)),
                           zero_blk_x,
                           _pad_to(params["w_hn"], (F_p, F_p))], axis=1).astype(bf16)  # (F_p, 4F_p)
    b_g = jnp.concatenate([_pad_to(params["b_ir"] + params["b_hr"], (1, F_p)),
                           _pad_to(params["b_iz"] + params["b_hz"], (1, F_p)),
                           _pad_to(params["b_in"], (1, F_p)),
                           _pad_to(params["b_hn"], (1, F_p))], axis=1)            # f32 (1, 4F_p)

    weights = (rep, w_e, b_e, w_ctx, w_x, b_g)

    def row_spec(*trailing):
        zeros = (0,) * len(trailing)
        return pl.BlockSpec((Rt,) + tuple(trailing), lambda i: (i,) + zeros)

    def const_spec(arr):
        zeros = (0,) * arr.ndim
        return pl.BlockSpec(arr.shape, lambda i: zeros)
    # TODO(synk): pl.Buffered(1) single-buffering of the constant weight specs deferred (small
    # VMEM saving at these sizes); likewise the 4-rows-per-lane-group gate packing (only pays
    # off if a profile shows the EUP slot saturating).

    # advisory cost hint for the XLA scheduler
    flops = 2 * R * (N * NEf + NEf * He_p + He_p * 4 * F_p + F_p * 4 * F_p)
    transcendentals = R * (N + He_p + 3 * F_p)
    weight_bytes = sum(int(w.size) * w.dtype.itemsize for w in weights)
    bytes_accessed = 4 * (logits_flat.size + ef_flat.size + x_flat.size + R * F_p) + weight_bytes
    cost = pl.CostEstimate(flops=int(flops), transcendentals=int(transcendentals),
                           bytes_accessed=int(bytes_accessed))

    out_flat = pl.pallas_call(
        attentive_gru1_kernel,
        out_shape=jax.ShapeDtypeStruct((R, F_p), jnp.float32),
        grid=(R // Rt,),
        in_specs=[row_spec(N), row_spec(NEf), row_spec(F_p)]
                 + [const_spec(w) for w in weights],
        out_specs=row_spec(F_p),
        compiler_params=pltpu.CompilerParams(
            dimension_semantics=("parallel",),          # independent row tiles -> v7x 2-TC sharding
            vmem_limit_bytes=32 * 1024 * 1024),
        cost_estimate=cost,
    )(logits_flat, ef_flat, x_flat, *weights)

    return out_flat[:, :F].reshape(B, N, F)


def reference(edge_logits, adj_mask, edge_feats, node_feats, params):
    """Pure-JAX reference: dense, unsimplified (per-edge Linear), unpadded, f32."""
    masked = jnp.where(adj_mask > 0, edge_logits, -1e30)
    e = jnp.exp(masked - jnp.max(masked, axis=-1, keepdims=True)) * adj_mask
    a = e / jnp.maximum(jnp.sum(e, axis=-1, keepdims=True), 1e-30)       # (B, N, N)
    he = edge_feats @ params["w_e"] + params["b_e"]                      # (B, N, N, He)
    c = jnp.sum(a[..., None] * he, axis=2)                               # (B, N, He)
    context = jnp.where(c > 0, c, jnp.exp(c) - 1.0)                      # ELU
    x = node_feats
    r = jax.nn.sigmoid(context @ params["w_ir"] + params["b_ir"]
                       + x @ params["w_hr"] + params["b_hr"])
    z = jax.nn.sigmoid(context @ params["w_iz"] + params["b_iz"]
                       + x @ params["w_hz"] + params["b_hz"])
    n = jnp.tanh(context @ params["w_in"] + params["b_in"]
                 + r * (x @ params["w_hn"] + params["b_hn"]))
    h_new = (1.0 - z) * n + z * x
    return jnp.maximum(h_new, 0.0)


if __name__ == "__main__":
    B = 16                  # graphs in the batch
    N = 16                  # nodes per graph
    node_feat_size = 32     # F  (GRU hidden size)
    edge_feat_size = 16     # Ef (raw edge feature size)
    edge_hidden_size = 64   # He (GRU input size)

    key = jax.random.PRNGKey(0)
    ks = jax.random.split(key, 18)

    node_feats = jax.random.normal(ks[0], (B, N, node_feat_size), jnp.float32)
    edge_logits = jax.random.normal(ks[1], (B, N, N), jnp.float32)

    # Random adjacency with self-loops so every destination node has >= 1 incoming edge.
    adj_mask = (jax.random.uniform(ks[2], (B, N, N)) < 0.35).astype(jnp.float32)
    adj_mask = jnp.maximum(adj_mask, jnp.eye(N, dtype=jnp.float32))
    # TODO(synk): destination nodes with zero in-edges (c_v = 0 in DGL) are not handled by the
    # kernel's pre-masked softmax; the self-loop guarantee above makes that case unreachable here.

    edge_feats = jax.random.normal(ks[3], (B, N, N, edge_feat_size), jnp.float32)
    edge_feats = edge_feats * adj_mask[..., None]          # features only on existing edges

    scale = 0.1
    def w(k, shape):
        return scale * jax.random.normal(k, shape, jnp.float32)

    F, Ef, He = node_feat_size, edge_feat_size, edge_hidden_size
    params = {
        # edge_transform: nn.Dropout (identity in eval) + nn.Linear(Ef, He), stored as (in, out).
        "w_e": w(ks[4], (Ef, He)), "b_e": w(ks[5], (1, He)),
        # GRUCell(He, F): PyTorch weight_ih (3F, He) split row-wise into r/z/n gates and
        # transposed to (He, F) each; weight_hh (3F, F) likewise; biases split into (1, F) each.
        "w_ir": w(ks[6], (He, F)), "w_iz": w(ks[7], (He, F)), "w_in": w(ks[8], (He, F)),
        "w_hr": w(ks[9], (F, F)), "w_hz": w(ks[10], (F, F)), "w_hn": w(ks[11], (F, F)),
        "b_ir": w(ks[12], (1, F)), "b_iz": w(ks[13], (1, F)), "b_in": w(ks[14], (1, F)),
        "b_hr": w(ks[15], (1, F)), "b_hz": w(ks[16], (1, F)), "b_hn": w(ks[17], (1, F)),
    }
    # TODO(synk): nn.Dropout modeled in eval mode (identity); training-mode RNG masking not implemented.

    out = attentive_gru1(edge_logits, adj_mask, edge_feats, node_feats, params)
    out = jax.block_until_ready(out)

    ref = reference(edge_logits, adj_mask, edge_feats, node_feats, params)
    assert out.shape == (B, N, node_feat_size)
    # bf16 MXU operands -> loosened tolerance (elementwise/EUP math and accumulation stay f32)
    assert jnp.allclose(out, ref, atol=2e-2, rtol=2e-2), "mismatch vs pure-JAX reference"

    print("KERNEL_OK")
</pallas_src>

<mosaic_0001>
module attributes {stable_mosaic.version = 11 : i64} {
  func.func @attentive_gru1_kernel(%arg0: i32, %arg1: memref<32x16xf32, #tpu.memory_space<vmem>>, %arg2: memref<32x256xf32, #tpu.memory_space<vmem>>, %arg3: memref<32x128xf32, #tpu.memory_space<vmem>>, %arg4: memref<16x256xbf16, #tpu.memory_space<vmem>>, %arg5: memref<256x128xbf16, #tpu.memory_space<vmem>>, %arg6: memref<1x128xf32, #tpu.memory_space<vmem>>, %arg7: memref<128x512xbf16, #tpu.memory_space<vmem>>, %arg8: memref<128x512xbf16, #tpu.memory_space<vmem>>, %arg9: memref<1x512xf32, #tpu.memory_space<vmem>>, %arg10: memref<32x128xf32, #tpu.memory_space<vmem>>) attributes {dimension_semantics = [#tpu.dimension_semantics<parallel>], iteration_bounds = array<i64: 8>, scalar_prefetch = 0 : i64, scratch_operands = 0 : i64, tpu.core_type = #tpu.core_type<tc>, window_params = [{transform_indices = @transform_0, window_bounds = array<i64: 32, 16>}, {transform_indices = @transform_1, window_bounds = array<i64: 32, 256>}, {transform_indices = @transform_2, window_bounds = array<i64: 32, 128>}, {pipeline_mode = #tpu.pipeline_mode<synchronous>, transform_indices = @transform_3, window_bounds = array<i64: 16, 256>}, {pipeline_mode = #tpu.pipeline_mode<synchronous>, transform_indices = @transform_4, window_bounds = array<i64: 256, 128>}, {pipeline_mode = #tpu.pipeline_mode<synchronous>, transform_indices = @transform_5, window_bounds = array<i64: 1, 128>}, {pipeline_mode = #tpu.pipeline_mode<synchronous>, transform_indices = @transform_6, window_bounds = array<i64: 128, 512>}, {pipeline_mode = #tpu.pipeline_mode<synchronous>, transform_indices = @transform_7, window_bounds = array<i64: 128, 512>}, {pipeline_mode = #tpu.pipeline_mode<synchronous>, transform_indices = @transform_8, window_bounds = array<i64: 1, 512>}, {transform_indices = @transform_9, window_bounds = array<i64: 32, 128>}]} {
    %c0 = arith.constant 0 : index
    %c0_0 = arith.constant 0 : index
    %0 = vector.load %arg1[%c0, %c0_0] : memref<32x16xf32, #tpu.memory_space<vmem>>, vector<32x16xf32>
    %cst = arith.constant dense<0xFF800000> : vector<32xf32>
    %1 = vector.multi_reduction <maximumf>, %0, %cst [1] : vector<32x16xf32> to vector<32xf32>
    %2 = vector.shape_cast %1 : vector<32xf32> to vector<32x1xf32>
    %3 = vector.broadcast %2 : vector<32x1xf32> to vector<32x16xf32>
    %4 = arith.subf %0, %3 : vector<32x16xf32>
    %5 = math.exp %4 : vector<32x16xf32>
    %cst_1 = arith.constant dense<0.000000e+00> : vector<32xf32>
    %6 = vector.multi_reduction <add>, %5, %cst_1 [1] : vector<32x16xf32> to vector<32xf32>
    %7 = vector.shape_cast %6 : vector<32xf32> to vector<32x1xf32>
    %8 = tpu.reciprocal %7 {approx = true} : vector<32x1xf32> -> vector<32x1xf32>
    %9 = arith.mulf %7, %8 : vector<32x1xf32>
    %cst_2 = arith.constant 2.000000e+00 : f32
    %10 = vector.broadcast %cst_2 : f32 to vector<32x1xf32>
    %11 = arith.subf %10, %9 : vector<32x1xf32>
    %12 = arith.mulf %8, %11 : vector<32x1xf32>
    %13 = vector.broadcast %12 : vector<32x1xf32> to vector<32x16xf32>
    %14 = arith.mulf %5, %13 : vector<32x16xf32>
    %15 = arith.truncf %14 : vector<32x16xf32> to vector<32x16xbf16>
    %c0_3 = arith.constant 0 : index
    %c0_4 = arith.constant 0 : index
    %16 = vector.load %arg4[%c0_3, %c0_4] : memref<16x256xbf16, #tpu.memory_space<vmem>>, vector<16x256xbf16>
    %cst_5 = arith.constant dense<0.000000e+00> : vector<32x256xf32>
    %17 = tpu.matmul %15, %16, %cst_5 {dimension_numbers = #tpu.dot_dimension_numbers<[1], [0], [0], [1], [0, 0, 1, 1], [], []>} : vector<32x16xbf16>, vector<16x256xbf16>, vector<32x256xf32> -> vector<32x256xf32>
    %c0_6 = arith.constant 0 : index
    %c0_7 = arith.constant 0 : index
    %18 = vector.load %arg2[%c0_6, %c0_7] : memref<32x256xf32, #tpu.memory_space<vmem>>, vector<32x256xf32>
    %19 = arith.mulf %17, %18 : vector<32x256xf32>
    %20 = arith.truncf %19 : vector<32x256xf32> to vector<32x256xbf16>
    %c0_8 = arith.constant 0 : index
    %c0_9 = arith.constant 0 : index
    %21 = vector.load %arg5[%c0_8, %c0_9] : memref<256x128xbf16, #tpu.memory_space<vmem>>, vector<256x128xbf16>
    %cst_10 = arith.constant dense<0.000000e+00> : vector<32x128xf32>
    %22 = tpu.matmul %20, %21, %cst_10 {dimension_numbers = #tpu.dot_dimension_numbers<[1], [0], [0], [1], [0, 0, 1, 1], [], []>} : vector<32x256xbf16>, vector<256x128xbf16>, vector<32x128xf32> -> vector<32x128xf32>
    %c0_11 = arith.constant 0 : index
    %c0_12 = arith.constant 0 : index
    %23 = vector.load %arg6[%c0_11, %c0_12] : memref<1x128xf32, #tpu.memory_space<vmem>>, vector<1x128xf32>
    %24 = vector.broadcast %23 : vector<1x128xf32> to vector<32x128xf32>
    %25 = arith.addf %22, %24 : vector<32x128xf32>
    %cst_13 = arith.constant 0.000000e+00 : f32
    %26 = vector.broadcast %cst_13 : f32 to vector<32x128xf32>
    %27 = arith.cmpf ogt, %25, %26 : vector<32x128xf32>
    %28 = math.exp %25 : vector<32x128xf32>
    %cst_14 = arith.constant 1.000000e+00 : f32
    %29 = vector.broadcast %cst_14 : f32 to vector<32x128xf32>
    %30 = arith.subf %28, %29 : vector<32x128xf32>
    %31 = arith.select %27, %25, %30 : vector<32x128xi1>, vector<32x128xf32>
    %c0_15 = arith.constant 0 : index
    %c0_16 = arith.constant 0 : index
    %32 = vector.load %arg3[%c0_15, %c0_16] : memref<32x128xf32, #tpu.memory_space<vmem>>, vector<32x128xf32>
    %33 = arith.truncf %31 : vector<32x128xf32> to vector<32x128xbf16>
    %c0_17 = arith.constant 0 : index
    %c0_18 = arith.constant 0 : index
    %34 = vector.load %arg7[%c0_17, %c0_18] : memref<128x512xbf16, #tpu.memory_space<vmem>>, vector<128x512xbf16>
    %cst_19 = arith.constant dense<0.000000e+00> : vector<32x512xf32>
    %35 = tpu.matmul %33, %34, %cst_19 {dimension_numbers = #tpu.dot_dimension_numbers<[1], [0], [0], [1], [0, 0, 1, 1], [], []>} : vector<32x128xbf16>, vector<128x512xbf16>, vector<32x512xf32> -> vector<32x512xf32>
    %36 = arith.truncf %32 : vector<32x128xf32> to vector<32x128xbf16>
    %c0_20 = arith.constant 0 : index
    %c0_21 = arith.constant 0 : index
    %37 = vector.load %arg8[%c0_20, %c0_21] : memref<128x512xbf16, #tpu.memory_space<vmem>>, vector<128x512xbf16>
    %cst_22 = arith.constant dense<0.000000e+00> : vector<32x512xf32>
    %38 = tpu.matmul %36, %37, %cst_22 {dimension_numbers = #tpu.dot_dimension_numbers<[1], [0], [0], [1], [0, 0, 1, 1], [], []>} : vector<32x128xbf16>, vector<128x512xbf16>, vector<32x512xf32> -> vector<32x512xf32>
    %39 = arith.addf %35, %38 : vector<32x512xf32>
    %c0_23 = arith.constant 0 : index
    %c0_24 = arith.constant 0 : index
    %40 = vector.load %arg9[%c0_23, %c0_24] : memref<1x512xf32, #tpu.memory_space<vmem>>, vector<1x512xf32>
    %41 = vector.broadcast %40 : vector<1x512xf32> to vector<32x512xf32>
    %42 = arith.addf %39, %41 : vector<32x512xf32>
    %43 = vector.extract_strided_slice %42 {offsets = [0, 0], sizes = [32, 128], strides = [1, 1]} : vector<32x512xf32> to vector<32x128xf32>
    %44 = arith.negf %43 : vector<32x128xf32>
    %45 = math.exp %44 : vector<32x128xf32>
    %cst_25 = arith.constant 1.000000e+00 : f32
    %46 = vector.broadcast %cst_25 : f32 to vector<32x128xf32>
    %47 = arith.addf %46, %45 : vector<32x128xf32>
    %48 = arith.divf %46, %47 : vector<32x128xf32>
    %49 = vector.extract_strided_slice %42 {offsets = [0, 128], sizes = [32, 128], strides = [1, 1]} : vector<32x512xf32> to vector<32x128xf32>
    %50 = arith.negf %49 : vector<32x128xf32>
    %51 = math.exp %50 : vector<32x128xf32>
    %cst_26 = arith.constant 1.000000e+00 : f32
    %52 = vector.broadcast %cst_26 : f32 to vector<32x128xf32>
    %53 = arith.addf %52, %51 : vector<32x128xf32>
    %54 = arith.divf %52, %53 : vector<32x128xf32>
    %55 = vector.extract_strided_slice %42 {offsets = [0, 256], sizes = [32, 128], strides = [1, 1]} : vector<32x512xf32> to vector<32x128xf32>
    %56 = vector.extract_strided_slice %42 {offsets = [0, 384], sizes = [32, 128], strides = [1, 1]} : vector<32x512xf32> to vector<32x128xf32>
    %57 = arith.mulf %48, %56 : vector<32x128xf32>
    %58 = arith.addf %55, %57 : vector<32x128xf32>
    %59 = math.tanh %58 : vector<32x128xf32>
    %cst_27 = arith.constant 1.000000e+00 : f32
    %60 = vector.broadcast %cst_27 : f32 to vector<32x128xf32>
    %61 = arith.subf %60, %54 : vector<32x128xf32>
    %62 = arith.mulf %61, %59 : vector<32x128xf32>
    %63 = arith.mulf %54, %32 : vector<32x128xf32>
    %64 = arith.addf %62, %63 : vector<32x128xf32>
    %cst_28 = arith.constant 0.000000e+00 : f32
    %65 = vector.broadcast %cst_28 : f32 to vector<32x128xf32>
    %66 = arith.maximumf %64, %65 : vector<32x128xf32>
    %c0_29 = arith.constant 0 : index
    %c0_30 = arith.constant 0 : index
    %67 = vector.load %arg10[%c0_29, %c0_30] : memref<32x128xf32, #tpu.memory_space<vmem>>, vector<32x128xf32>
    tpu.vector_store %arg10[%c0_29, %c0_30], %66 {strides = array<i32>} : memref<32x128xf32, #tpu.memory_space<vmem>>, vector<32x128xf32>,
    return
  }
  func.func @transform_0(%arg0: i32) -> (i32, i32) {
    %c0_i32 = arith.constant 0 : i32
    %c0_i32_0 = arith.constant 0 : i32
    return %arg0, %c0_i32 : i32, i32
  }
  func.func @transform_1(%arg0: i32) -> (i32, i32) {
    %c0_i32 = arith.constant 0 : i32
    %c0_i32_0 = arith.constant 0 : i32
    return %arg0, %c0_i32 : i32, i32
  }
  func.func @transform_2(%arg0: i32) -> (i32, i32) {
    %c0_i32 = arith.constant 0 : i32
    %c0_i32_0 = arith.constant 0 : i32
    return %arg0, %c0_i32 : i32, i32
  }
  func.func @transform_3(%arg0: i32) -> (i32, i32) {
    %c0_i32 = arith.constant 0 : i32
    %c0_i32_0 = arith.constant 0 : i32
    %c0_i32_1 = arith.constant 0 : i32
    return %c0_i32, %c0_i32_0 : i32, i32
  }
  func.func @transform_4(%arg0: i32) -> (i32, i32) {
    %c0_i32 = arith.constant 0 : i32
    %c0_i32_0 = arith.constant 0 : i32
    %c0_i32_1 = arith.constant 0 : i32
    return %c0_i32, %c0_i32_0 : i32, i32
  }
  func.func @transform_5(%arg0: i32) -> (i32, i32) {
    %c0_i32 = arith.constant 0 : i32
    %c0_i32_0 = arith.constant 0 : i32
    %c0_i32_1 = arith.constant 0 : i32
    return %c0_i32, %c0_i32_0 : i32, i32
  }
  func.func @transform_6(%arg0: i32) -> (i32, i32) {
    %c0_i32 = arith.constant 0 : i32
    %c0_i32_0 = arith.constant 0 : i32
    %c0_i32_1 = arith.constant 0 : i32
    return %c0_i32, %c0_i32_0 : i32, i32
  }
  func.func @transform_7(%arg0: i32) -> (i32, i32) {
    %c0_i32 = arith.constant 0 : i32
    %c0_i32_0 = arith.constant 0 : i32
    %c0_i32_1 = arith.constant 0 : i32
    return %c0_i32, %c0_i32_0 : i32, i32
  }
  func.func @transform_8(%arg0: i32) -> (i32, i32) {
    %c0_i32 = arith.constant 0 : i32
    %c0_i32_0 = arith.constant 0 : i32
    %c0_i32_1 = arith.constant 0 : i32
    return %c0_i32, %c0_i32_0 : i32, i32
  }
  func.func @transform_9(%arg0: i32) -> (i32, i32) {
    %c0_i32 = arith.constant 0 : i32
    %c0_i32_0 = arith.constant 0 : i32
    return %arg0, %c0_i32 : i32, i32
  }
}

</mosaic_0001>

<bundles_post_ra>
// kernel: tpu_custom_call.1
= control target key start
LH: loop header
LB: loop body
LE: loop exit
PB: predicated region body
PF: predicated region fallthrough
CT: control target
= control target key end

     0   :  { %s2798_s0 = inlined_call_operand.vmem [shape: f32[256,16], index: 0, kind: input, shape index: {}]   ;;  %s2799_s1 = inlined_call_operand.hbm [shape: f32[256,256], index: 1, kind: input, shape index: {}]   ;;  %s2800_s2 = inlined_call_operand.vmem [shape: f32[256,128], index: 2, kind: input, shape index: {}]   ;;  %s2801_s3 = inlined_call_operand.vmem [shape: bf16[16,256], index: 3, kind: input, shape index: {}]   ;;  %s2802_s4 = inlined_call_operand.hbm [shape: bf16[256,128], index: 4, kind: input, shape index: {}]   ;;  %s2803_s5 = inlined_call_operand.vmem [shape: f32[1,128], index: 5, kind: input, shape index: {}]   ;;  %s2804_s6 = inlined_call_operand.hbm [shape: bf16[128,512], index: 6, kind: input, shape index: {}]   ;;  %s2805_s7 = inlined_call_operand.hbm [shape: bf16[128,512], index: 7, kind: input, shape index: {}]   ;;  %s2806_s8 = inlined_call_operand.vmem [shape: f32[1,512], index: 8, kind: input, shape index: {}]   ;;  %s2807_s9 = inlined_call_operand.hbm [shape: f32[256,128], index: 9, kind: output, shape index: {}]  }
   0x1   :  { %2814 = sst [smem:[#allocation17_spill]] %s2802_s4 }
   0x2   :  { %2815 = sst [smem:[#allocation18_spill]] %s2807_s9 }
   0x3   :  { %14 = vsyncpa [#allocation3], 0 }
   0x4   :  { %16 = vsyncpa [#allocation3 + $0x1], 0 }
   0x5   :  { %17 = vsyncpa [#allocation6], 0 }
   0x6   :  { %18 = vsyncpa [#allocation9], 0 }
   0x7   :  { %19 = vsyncpa [#allocation4], 0 }
   0x8   :  { %21 = vsyncpa [#allocation4 + $0x1], 0  ;;  %s2367_s30 = smov 0   ;;  %s2369_s10 = smov 0  }
   0x9   :  { %s2371_s11 = smov 0   ;;  %s2373_s12 = smov 0  }
   0xa LB: > { %2816 = sst [smem:[#allocation15_spill]] %s2291_s30  ;;  %s2388_s13 = sadd.s32 4294967295, %s2303_s12   ;;  %s2303_s12 = sphi %s2373_s12, %s2840_s12   ;;  %s2299_s11 = sphi %s2371_s11, %s2839_s11   ;;  %s2295_s10 = sphi %s2369_s10, %s2838_s10   ;;  %s2291_s30 = sphi %s2367_s30, %s2837_s30  }
   0xb   : > { %s1667_s14 = sadd.s32 4294967294, %s2303_s12   ;;  %p73_p0 = scmp.ne.s32.totalorder %s2295_s10, %s2291_s30 }
   0xc   : > { %p2808_p1 = scmp.eq.s32.totalorder %s2388_s13, 0  ;;  %p255_p3 = scmp.eq.s32.totalorder %s1667_s14, 7 }
   0xd   : > { %p1668_p5 = scmp.ge.s32.totalorder %s2303_s12, 1  ;;  %p262_p7 = scmp.lt.s32.totalorder %s2303_s12, 9 }
   0xe   : > { %p2397_p4 = por %p2808_p1, %p73_p0  ;;  %p2402_p6 = por %p255_p3, %p73_p0 }
   0xf   : > { %p2407_p8 = pnand %p1668_p5, %p262_p7  ;;  %s2305_s18 = smov [#allocation5]  }
  0x10   : > { %s2817_s15 = scalar_select %p2397_p4, 1, 0 }
  0x11   : > { %s2818_s16 = scalar_select %p2402_p6, 1, 0 }
  0x12   : > { %s2820_s17 = scalar_select %p2407_p8, 1, 0 }
  0x13   : > { %2819 = sst [smem:[#allocation16_spill]] %s2818_s16  ;;  %s277_s19 = sshll.u32 %s2305_s18, 4  ;;  %s278_s19 = int_to_ptr.vmem [resolvable:$true] %s277_s19 }
  0x14   : > { %p1868_p9 = pneg %p2407_p8  ;;  %s2306_s21 = smov [#allocation7]  }
  0x15   : > { %s293_s22 = sshll.u32 %s2306_s21, 4  ;;  %s2822_s4 = sld [smem:[#allocation17_spill]]  ;;  %s2419_s22 = int_to_ptr.vmem [resolvable:$true] %s293_s22 }
  0x16   : > { %p2415_p10 = pnand %p1868_p9, %p2808_p1 }
  0x18   : > { %p2429_p12 = pneg %p2415_p10 }
  0x1b   : > { %s2115_s25 = scalar_lea.hbm %s2822_s4, 2048 }
  0x1c   : > { %p2116_p11 = scmp.ne.s32.totalorder %s2822_s4, %s2115_s25  ;;  %p2122_p3 = scmp.lt.u32.totalorder %s2115_s25, %s2822_s4 }
  0x1e   : > { %p2118_p13 = pnand %p2429_p12, %p2116_p11 }
  0x20   : > { %p2119_p0 = pneg %p2118_p13 }
  0x22   : > { %p2124_p5 = pnand %p2122_p3, %p2119_p0 }
  0x24   : > { %2127 = shalt.err (!%p2124_p5)
}
  0x25   : > { %s2128_s18 = scalar_lea.vmem %s278_s19, 2048  ;;  %p2136_p2 = scmp.lt.s32.totalorder %s278_s19, %s278_s19 }
  0x26   : > { %p2129_p7 = scmp.ne.s32.totalorder %s278_s19, %s2128_s18  ;;  %p2137_p6 = scmp.lt.s32.totalorder %s2128_s18, %s2128_s18 }
  0x28   : > { %p2131_p9 = pnand %p2129_p7, %p2429_p12  ;;  %p2138_p4 = por %p2137_p6, %p2136_p2 }
  0x2a   : > { %p2132_p1 = pneg %p2131_p9 }
  0x2c   : > { %p2139_p8 = pnand %p2138_p4, %p2132_p1 }
  0x2e   : > { %2142 = shalt.err (!%p2139_p8)
}
  0x2f   : > { %s2307_s21 = smov 64   ;;  %s2308_s23 = smov 4  }
  0x30   : > { %1871 = dma.hbm_to_vmem [thread:$0]  (!%p2415_p10), %s2822_s4, 2048, %s278_s19, [#allocation6], %s2307_s21, %s2307_s21, %s2308_s23  }
  0x31   : > { %s2143_s29 = scalar_lea.hbm %s2804_s6, 4096 }
  0x32   : > { %p2144_p11 = scmp.ne.s32.totalorder %s2804_s6, %s2143_s29  ;;  %p2150_p4 = scmp.lt.u32.totalorder %s2143_s29, %s2804_s6 }
  0x34   : > { %p2146_p1 = pnand %p2144_p11, %p2429_p12 }
  0x36   : > { %p2147_p2 = pneg %p2146_p1 }
  0x38   : > { %p2152_p6 = pnand %p2150_p4, %p2147_p2 }
  0x3a   : > { %2155 = shalt.err (!%p2152_p6)
}
  0x3b   : > { %s2156_s19 = scalar_lea.vmem %s2419_s22, 4096  ;;  %p2164_p3 = scmp.lt.s32.totalorder %s2419_s22, %s2419_s22 }
  0x3c   : > { %p2157_p8 = scmp.ne.s32.totalorder %s2419_s22, %s2156_s19  ;;  %p2165_p5 = scmp.lt.s32.totalorder %s2156_s19, %s2156_s19 }
  0x3e   : > { %p2159_p13 = pnand %p2157_p8, %p2429_p12  ;;  %p2166_p7 = por %p2165_p5, %p2164_p3 }
  0x40   : > { %p2160_p0 = pneg %p2159_p13 }
  0x42   : > { %p2167_p9 = pnand %p2166_p7, %p2160_p0 }
  0x44   : > { %2170 = shalt.err (!%p2167_p9)
}
  0x45   : > { %s2309_s16 = smov 256   ;;  %s2310_s30 = smov 16  }
  0x46   : > { %1874 = dma.hbm_to_vmem [thread:$0]  (!%p2415_p10), %s2804_s6, 4096, %s2419_s22, [#allocation6], %s2309_s16, %s2309_s16, %s2310_s30  }
  0x47   : > { %s2311_s24 = smov [#allocation8]   ;;  %s2472_s26 = sadd.s32 1, %s2303_s12  }
  0x48   : > { %s306_s25 = sshll.u32 %s2311_s24, 4  ;;  %s2171_s14 = scalar_lea.hbm %s2805_s7, 4096  ;;  %s307_s25 = int_to_ptr.vmem [resolvable:$true] %s306_s25 }
  0x49   : > { %p2172_p11 = scmp.ne.s32.totalorder %s2805_s7, %s2171_s14  ;;  %p2178_p4 = scmp.lt.u32.totalorder %s2171_s14, %s2805_s7 }
  0x4b   : > { %p2174_p1 = pnand %p2172_p11, %p2429_p12 }
  0x4d   : > { %p2175_p2 = pneg %p2174_p1 }
  0x4f   : > { %p2180_p6 = pnand %p2178_p4, %p2175_p2 }
  0x51   : > { %2183 = shalt.err (!%p2180_p6)
}
  0x52   : > { %s2184_s22 = scalar_lea.vmem %s307_s25, 4096  ;;  %p2192_p3 = scmp.lt.s32.totalorder %s307_s25, %s307_s25 }
  0x53   : > { %p2185_p8 = scmp.ne.s32.totalorder %s307_s25, %s2184_s22  ;;  %p2193_p5 = scmp.lt.s32.totalorder %s2184_s22, %s2184_s22 }
  0x55   : > { %p2187_p13 = pnand %p2185_p8, %p2429_p12  ;;  %p2194_p7 = por %p2193_p5, %p2192_p3 }
  0x57   : > { %p2188_p0 = pneg %p2187_p13 }
  0x59   : > { %p2195_p9 = pnand %p2194_p7, %p2188_p0 }
  0x5b   : > { %2198 = shalt.err (!%p2195_p9)
}
  0x5c   : > { %1877 = dma.hbm_to_vmem [thread:$0]  (!%p2415_p10), %s2805_s7, 4096, %s307_s25, [#allocation9], %s2309_s16, %s2309_s16, %s2310_s30  }
  0x5d   : > { %s57_s28 = ssub.s32 %s2303_s12, %s2472_s26  ;;  %s60_s20 = sadd.s32 1, %s2299_s11 }
  0x5e   : > { %p58_p12 = scmp.eq.s32.totalorder %s57_s28, 0  ;;  %p67_p11 = scmp.ne.s32.totalorder %s2299_s11, %s2295_s10 }
  0x5f   : > { %p68_p1 = scmp.eq.s32.totalorder %s2303_s12, 0  ;;  %p1889_p2 = scmp.lt.s32.totalorder %s2303_s12, 8 }
  0x60   : > { %s2503_s21 = scalar_select %p58_p12, %s2299_s11, %s60_s20  }
  0x61   : > { %p69_p4 = por %p68_p1, %p67_p11  ;;  %p2824_p6 = scmp.eq.s32.totalorder %s2388_s13, 7 }
  0x62   : > { %s332_s24 = sand.u32 1, %s2299_s11   ;;  %s1790_s27 = sshll.u32 %s2303_s12, 10 }
  0x63   : > { %p2507_p8 = por %p2824_p6, %p67_p11  ;;  %s1673_s29 = sshll.u32 %s332_s24, 6 }
  0x64   : > { %s2516_s25 = scalar_lea.hbm %s2799_s1, %s1790_s27  ;;  %s336_s19 = scalar_lea.vmem [#allocation2], %s1673_s29 }
  0x65   : > { %s344_s22 = sshll.u32 %s336_s19, 4  ;;  %p2518_p10 = pnand %p1889_p2, %p69_p4  ;;  %s2522_s22 = int_to_ptr.vmem [resolvable:$true] %s344_s22 }
  0x66   : > { %s2524_s9 = scalar_lea.sflag [#allocation3], %s332_s24  ;;  %s2199_s28 = scalar_lea.hbm %s2516_s25, 1024 }
  0x67   : > { %p2200_p13 = scmp.ne.s32.totalorder %s2516_s25, %s2199_s28  ;;  %p2201_p0 = pneg %p2518_p10 }
  0x68   : > { %s2204_s29 = scalar_lea.hbm %s2799_s1, 8192  ;;  %p2205_p7 = scmp.lt.u32.totalorder %s2516_s25, %s2799_s1 }
  0x69   : > { %p2202_p3 = pnand %p2201_p0, %p2200_p13  ;;  %p2206_p9 = scmp.lt.u32.totalorder %s2204_s29, %s2199_s28 }
  0x6a   : > { %p2208_p11 = scmp.lt.u32.totalorder %s2199_s28, %s2516_s25 }
  0x6b   : > { %p2203_p5 = pneg %p2202_p3  ;;  %p2207_p12 = por %p2206_p9, %p2205_p7 }
  0x6d   : > { %p2209_p1 = por %p2208_p11, %p2207_p12 }
  0x6f   : > { %p2210_p2 = pnand %p2209_p1, %p2203_p5 }
  0x71   : > { %2213 = shalt.err (!%p2210_p2)
}
  0x72   : > { %s2214_s24 = scalar_lea.vmem %s2522_s22, 1024  ;;  %s2312_s19 = smov [#allocation2]  }
  0x73   : > { %p2215_p4 = scmp.ne.s32.totalorder %s2522_s22, %s2214_s24  ;;  %s2219_s20 = sshll.u32 %s2312_s19, 4  ;;  %s2220_s20 = int_to_ptr.vmem [resolvable:$false] %s2219_s20 }
  0x74   : > { %s2221_s27 = scalar_lea.vmem %s2220_s20, 2048  ;;  %p2222_p3 = scmp.lt.s32.totalorder %s2522_s22, %s2220_s20 }
  0x75   : > { %p2217_p6 = pnand %p2215_p4, %p2201_p0  ;;  %p2223_p7 = scmp.lt.s32.totalorder %s2221_s27, %s2214_s24 }
  0x77   : > { %p2218_p13 = pneg %p2217_p6  ;;  %p2224_p9 = por %p2223_p7, %p2222_p3 }
  0x79   : > { %p2225_p12 = pnand %p2224_p9, %p2218_p13 }
  0x7b   : > { %2228 = shalt.err (!%p2225_p12)
}
  0x7c   : > { %1881 = dma.hbm_to_vmem [thread:$0]  (!%p2518_p10), %s2516_s25, 1024, %s2522_s22, %s2524_s9, %s2309_s16, %s2309_s16, %s2310_s30  }
  0x7d   : > { %p2827_p0 = scmp.ne.s32.totalorder %s2820_s17, 0 }
  0x7e   : > { %s2558_s28 = sand.u32 (!%p2827_p0), 1, %s2295_s10   ;;  %p2828_p5 = scmp.ne.s32.totalorder (!%p2827_p0), %s2817_s15, 0 }
  0x7f   : > { %365 = sbr.rel (%p2827_p0) target bundleno = 1218 (0x4c2), region = 56  ;;  %s1678_s29 = sshll.u32 (!%p2827_p0), %s2558_s28, 6 }
  0x80   : > { %s368_s14 = scalar_lea.sflag (!%p2827_p0), [#allocation3], %s2558_s28  ;;  %s2562_s18 = scalar_lea.vmem (!%p2827_p0), [#allocation2], %s1678_s29 }
  0x86   : > { %2274 = dma.done.wait (%p2828_p5), %s368_s14, 1024  }
  0x87   : > { %2276 = vsyncadd (%p2828_p5), %s368_s14, 4294966272  ;;  %p2829_p10 = scmp.eq.s32.totalorder %s2388_s13, 0 }
  0x89   : > { %2278 = dma.done.wait (%p2829_p10), [#allocation6], 6144   ;;  %p2830_p11 = pmov %p2829_p10 }
  0x8a   : > { %p2831_p1 = pmov %p2829_p10 }
  0x8b   : > { %2280 = vsyncadd (%p2830_p11), [#allocation6], 4294961152 }
  0x8c   : > { %2282 = dma.done.wait (%p2831_p1), [#allocation9], 4096   ;;  %p2832_p2 = pmov %p2831_p1 }
  0x8d   : > { %s1683_s17 = sshll.u32 %s2388_s13, 2  ;;  %vm447_vm0 = vcmask 130048   ;;  %v1936_v28 = vld [vmem:[%s2801_s3 + $0x4] ss:$8 sps:$4 sm:$0xff]   ;;  %v1938_v29 = vld [vmem:[%s2801_s3] ss:$8 sps:$4 sm:$0xff]  }
  0x8e   : > { %2284 = vsyncadd (%p2832_p2), [#allocation9], 4294963200  ;;  %p429_p4 = scmp.lt.s32.totalorder %s1683_s17, 31  ;;  %524 = vmatprep.subr.bf16.mxu0 %v1936_v28  ;;  %v2313_v30 = vmov 0   ;;  %v1939_v31 = vld [vmem:[#allocation5 + $0x40] sm:$0xff]   ;;  %v1941_v33 = vld [vmem:[#allocation5 + $0x48] sm:$0xff]  }
  0x8f   : > { %525 = vmatpush1.bf16.msra.mxu0 %v1938_v29  ;;  %556 = vmatprep.mubr.bf16.mxu0 %v2313_v30  ;;  %v1940_v32 = vld [vmem:[#allocation5] sm:$0xff]   ;;  %v1942_v34 = vld [vmem:[#allocation5 + $0x8] sm:$0xff]   ;;  %v1943_v35 = vld [vmem:[#allocation5 + $0x50] sm:$0xff]   ;;  %s1791_s16 = sshll.u32 %s2388_s13, 9  ;;  %s2833_s9 = sld [smem:[#allocation18_spill]] }
  0x90   : > { %s2842_s17 = smov (!%p429_p4, %s1683_s17), 31  ;;  %1792 = vmatprep.subr.bf16.mxu1 %v1939_v31  ;;  %v1944_v36 = vld [vmem:[#allocation5 + $0x10] sm:$0xff]   ;;  %v1945_v37 = vld [vmem:[#allocation5 + $0x58] sm:$0xff]   ;;  %v1947_v39 = vld [vmem:[#allocation5 + $0x60] sm:$0xff]   ;;  %s1528_s13 = scalar_lea.sflag [#allocation4], %s2558_s28 }
  0x91   : > { %s1684_s15 = sshll.u32 %s2842_s17, 3  ;;  %1793 = vmatpush3.bf16.msra.mxu1 %v1940_v32  ;;  %v1946_v38 = vld [vmem:[#allocation5 + $0x18] sm:$0xff]   ;;  %v1948_v40 = vld [vmem:[#allocation5 + $0x20] sm:$0xff]   ;;  %v1949_v41 = vld [vmem:[#allocation5 + $0x68] sm:$0xff]   ;;  %s2314_s20 = smov [#allocation10]  }
  0x92   : > { %s432_s25 = scalar_lea.vmem %s2798_s0, %s1684_s15  ;;  %1794 = vmatprep.subr.bf16.mxu1 %v1941_v33  ;;  %v1950_v42 = vld [vmem:[#allocation5 + $0x28] sm:$0xff]   ;;  %s2617_s27 = scalar_lea.vmem %s2800_s2, %s1684_s15  ;;  %v1999_v28 = vld [vmem:[#allocation7 + $0x4] ss:$16 sps:$4 sm:$0xff]   ;;  %v1997_v31 = vld [vmem:[#allocation7] ss:$16 sps:$4 sm:$0xff]  }
  0x93   : > { %v443_v0 = vld [vmem:[%s432_s25] sm:$0xff]  ;;  %v445_v2 = vld [vmem:[%s432_s25 + $0x10] sm:$0xff]  ;;  %v444_v3 = vld [vmem:[%s432_s25 + $0x8] sm:$0xff]  ;;  %s1682_s15 = sshll.u32 %s2558_s28, 5 }
  0x94   : > { %v448_v1 = vsel %vm447_vm0, %v443_v0, -inf  ;;  %v446_v4 = vld [vmem:[%s432_s25 + $0x18] sm:$0xff]  ;;  %v454_v5 = vsel %vm447_vm0, %v445_v2, -inf  ;;  %v451_v6 = vsel %vm447_vm0, %v444_v3, -inf  ;;  %v2005_v32 = vld [vmem:[#allocation7 + $0x24] ss:$16 sps:$4 sm:$0xff]  }
  0x95   : > { %449 = vmax.xlane.f32.xlu0 %v448_v1  ;;  %v457_v7 = vsel %vm447_vm0, %v446_v4, -inf  ;;  %455 = vmax.xlane.f32.xlu1 %v454_v5  ;;  %v1951_v5 = vld [vmem:[#allocation5 + $0x70] sm:$0xff]   ;;  %s427_s30 = scalar_lea.vmem [#allocation10], %s1682_s15  ;;  %s2753_s24 = scalar_lea.hbm %s2833_s9, %s1791_s16 }
  0x96   : > { %1795 = vmatpush3.bf16.msra.mxu1 %v1942_v34  ;;  %v2003_v33 = vld [vmem:[#allocation7 + $0x20] ss:$16 sps:$4 sm:$0xff]   ;;  %s1541_s25 = sshll.u32 %s427_s30, 4  ;;  %s2755_s25 = int_to_ptr.vmem [resolvable:$true] %s1541_s25 }
  0x97   : > { %1796 = vmatprep.subr.bf16.mxu1 %v1943_v35  ;;  %v577_v35 = vld [vmem:[%s2562_s18] sm:$0xff]  ;;  %s2229_s19 = scalar_lea.vmem %s2755_s25, 512 }
  0x98   : > { %p2230_p6 = scmp.ne.s32.totalorder %s2755_s25, %s2229_s19 }
  0x99   : > { %452 = vmax.xlane.f32.xlu0 %v451_v6  ;;  %458 = vmax.xlane.f32.xlu1 %v457_v7  ;;  %v1952_v6 = vld [vmem:[#allocation5 + $0x30] sm:$0xff]   ;;  %v1953_v7 = vld [vmem:[#allocation5 + $0x78] sm:$0xff]  }
  0x9a   : > { %1797 = vmatpush3.bf16.msra.mxu1 %v1944_v36  ;;  %v579_v36 = vld [vmem:[%s2562_s18 + $0x10] sm:$0xff]  ;;  %p2231_p13 = pnand %p2230_p6, %p2507_p8 }
  0x9b   : > { %1798 = vmatprep.subr.bf16.mxu1 %v1945_v37 }
  0x9c   : > { %p2232_p3 = pneg %p2231_p13 }
  0x9e   : > { %1799 = vmatpush3.bf16.msra.mxu1 %v1946_v38  ;;  %v578_v38 = vld [vmem:[%s2562_s18 + $0x8] sm:$0xff] }
  0x9f   : > { %1800 = vmatprep.subr.bf16.mxu1 %v1947_v39  ;;  %v580_v39 = vld [vmem:[%s2562_s18 + $0x18] sm:$0xff] }
  0xa2   : > { %1801 = vmatpush3.bf16.msra.mxu1 %v1948_v40 }
  0xa3   : > { %1802 = vmatprep.subr.bf16.mxu1 %v1949_v41 }
  0xa6   : > { %1803 = vmatpush3.bf16.msra.mxu1 %v1950_v42 }
  0xa7   : > { %1804 = vmatprep.subr.bf16.mxu1 %v1951_v5  ;;  %v1990_v5 = vld [vmem:[#allocation8 + $0x8c] ss:$16 sps:$4 sm:$0xff]  }
  0xaa   : > { %1805 = vmatpush3.bf16.msra.mxu1 %v1952_v6  ;;  %v1988_v6 = vld [vmem:[#allocation8 + $0x88] ss:$16 sps:$4 sm:$0xff]  }
  0xab   : > { %1806 = vmatprep.subr.bf16.mxu1 %v1953_v7  ;;  %v1996_v7 = vld [vmem:[#allocation8 + $0xac] ss:$16 sps:$4 sm:$0xff]  }
 0x122   : > { %v450_v8 = vpop.xlane.xlu0 %449  ;;  %v456_v10 = vpop.xlane.xlu1 %455 }
 0x123   : > { %v460_v9 = vsub.f32 %v443_v0, %v450_v8  ;;  %v462_v11 = vsub.f32 %v445_v2, %v456_v10  ;;  %v1954_v8 = vld [vmem:[#allocation5 + $0x38] sm:$0xff]   ;;  %v1957_v10 = vld [vmem:[#allocation8 + $0x4] ss:$16 sps:$4 sm:$0xff]  }
 0x124   : > { %1807 = vmatpush3.bf16.msra.mxu1 %v1954_v8  ;;  %1033 = vmatprep.subr.bf16.mxu0 %v1957_v10  ;;  %v1994_v8 = vld [vmem:[#allocation8 + $0xa8] ss:$16 sps:$4 sm:$0xff]  }
 0x125   : > { %v464_v12 = vmul.f32 1.442695, %v460_v9  ;;  %v468_v13 = vmul.f32 1.442695, %v462_v11  ;;  %v1955_v9 = vld [vmem:[#allocation8] ss:$16 sps:$4 sm:$0xff]  }
 0x126   : > { %v453_v14 = vpop.xlane.xlu0 %452  ;;  %v459_v16 = vpop.xlane.xlu1 %458  ;;  %v1960_v11 = vld [vmem:[#allocation8 + $0x24] ss:$16 sps:$4 sm:$0xff]   ;;  %v2000_v10 = vld [vmem:[#allocation8 + $0xc8] ss:$16 sps:$4 sm:$0xff]  }
 0x127   : > { %2051 = vpow2.f32 %v464_v12  ;;  %v461_v15 = vsub.f32 %v444_v3, %v453_v14  ;;  %v463_v17 = vsub.f32 %v446_v4, %v459_v16  ;;  %v1966_v12 = vld [vmem:[#allocation8 + $0xc] ss:$16 sps:$4 sm:$0xff]   ;;  %v1963_v14 = vld [vmem:[#allocation8 + $0x44] ss:$16 sps:$4 sm:$0xff]  }
 0x128   : > { %2053 = vpow2.f32 %v468_v13  ;;  %v1958_v13 = vld [vmem:[#allocation8 + $0x20] ss:$16 sps:$4 sm:$0xff]   ;;  %1086 = vmatprep.subr.bf16.mxu1 %v1966_v12  ;;  %v1969_v16 = vld [vmem:[#allocation8 + $0x64] ss:$16 sps:$4 sm:$0xff]   ;;  %v2006_v12 = vld [vmem:[#allocation8 + $0xe8] ss:$16 sps:$4 sm:$0xff]  }
 0x129   : > { %v466_v18 = vmul.f32 1.442695, %v461_v15  ;;  %v470_v19 = vmul.f32 1.442695, %v463_v17  ;;  %v1961_v15 = vld [vmem:[#allocation8 + $0x40] ss:$16 sps:$4 sm:$0xff]  }
 0x12a   : > { %v1967_v17 = vld [vmem:[#allocation8 + $0x60] ss:$16 sps:$4 sm:$0xff]  }
 0x12b   : > { %2055 = vpow2.f32 %v466_v18  ;;  %v1975_v18 = vld [vmem:[#allocation8 + $0x84] ss:$16 sps:$4 sm:$0xff]  }
 0x12c   : > { %2057 = vpow2.f32 %v470_v19  ;;  %v1973_v19 = vld [vmem:[#allocation8 + $0x80] ss:$16 sps:$4 sm:$0xff]  }
 0x131   : > { %v2052_v20 = vpop.eup %2051 }
 0x132   : > { %v2589_v21 = vpop.eup %2053  ;;  %v472_v22 = vsel %vm447_vm0, %v2052_v20, 0.0 }
 0x133   : > { %473 = vadd.xlane.f32.xlu0 %v472_v22  ;;  %v478_v23 = vsel %vm447_vm0, %v2589_v21, 0.0  ;;  %v1987_v22 = vld [vmem:[#allocation8 + $0xc4] ss:$16 sps:$4 sm:$0xff]  }
 0x135   : > { %v2056_v24 = vpop.eup %2055 }
 0x136   : > { %v2594_v25 = vpop.eup %2057  ;;  %v475_v26 = vsel %vm447_vm0, %v2056_v24, 0.0 }
 0x137   : > { %479 = vadd.xlane.f32.xlu0 %v478_v23  ;;  %476 = vadd.xlane.f32.xlu1 %v475_v26  ;;  %v481_v27 = vsel %vm447_vm0, %v2594_v25, 0.0  ;;  %v1985_v23 = vld [vmem:[#allocation8 + $0xc0] ss:$16 sps:$4 sm:$0xff]   ;;  %v2623_v26 = vld [vmem:[%s2617_s27 + $0x8] sm:$0xff] }
 0x13b   : > { %482 = vadd.xlane.f32.xlu1 %v481_v27  ;;  %v1991_v27 = vld [vmem:[#allocation8 + $0xe0] ss:$16 sps:$4 sm:$0xff]  }
 0x1c0   : > { %v474_v43 = vpop.xlane.xlu0 %473 }
 0x1c1   : > { %2059 = vrcp.f32 %v474_v43 }
 0x1c4   : > { %v477_v44 = vpop.xlane.xlu1 %476  ;;  %v480_v45 = vpop.xlane.xlu0 %479 }
 0x1c5   : > { %2061 = vrcp.f32 %v477_v44 }
 0x1c6   : > { %2063 = vrcp.f32 %v480_v45 }
 0x1c8   : > { %v483_v46 = vpop.xlane.xlu1 %482 }
 0x1c9   : > { %2065 = vrcp.f32 %v483_v46 }
 0x1cb   : > { %v2060_v47 = vpop.eup %2059 }
 0x1cc   : > { %v488_v48 = vmul.f32 %v2060_v47, %v474_v43 }
 0x1ce   : > { %v492_v49 = vsub.f32 2.0, %v488_v48  ;;  %v1964_v48 = vld [vmem:[#allocation8 + $0x8] ss:$16 sps:$4 sm:$0xff]  }
 0x1cf   : > { %v2062_v50 = vpop.eup %2061 }
 0x1d0   : > { %v2064_v51 = vpop.eup %2063  ;;  %v489_v52 = vmul.f32 %v2062_v50, %v477_v44  ;;  %v496_v53 = vmul.f32 %v2060_v47, %v492_v49  ;;  %v1972_v49 = vld [vmem:[#allocation8 + $0x2c] ss:$16 sps:$4 sm:$0xff]  }
 0x1d1   : > { %v490_v55 = vmul.f32 %v2064_v51, %v480_v45 }
 0x1d2   : > { %v493_v54 = vsub.f32 2.0, %v489_v52  ;;  %v500_v59 = vmul.f32 %v2052_v20, %v496_v53  ;;  %v1981_v20 = vld [vmem:[#allocation8 + $0xa4] ss:$16 sps:$4 sm:$0xff]  }
 0x1d3   : > { %v2066_v56 = vpop.eup %2065  ;;  %v494_v61 = vsub.f32 2.0, %v490_v55  ;;  %v583_v52 = vld [vmem:[%s2562_s18 + $0x30] sm:$0xff]  ;;  %v584_v55 = vld [vmem:[%s2562_s18 + $0x38] sm:$0xff] }
 0x1d4   : > { %v497_v57 = vmul.f32 %v2062_v50, %v493_v54  ;;  %v491_v58 = vmul.f32 %v2066_v56, %v483_v46  ;;  %v582_v54 = vld [vmem:[%s2562_s18 + $0x28] sm:$0xff] }
 0x1d5   : > { %v498_v1 = vmul.f32 %v2064_v51, %v494_v61  ;;  %v581_v51 = vld [vmem:[%s2562_s18 + $0x20] sm:$0xff]  ;;  %v1978_v61 = vld [vmem:[#allocation8 + $0x4c] ss:$16 sps:$4 sm:$0xff]  }
 0x1d6   : > { %v501_v60 = vmul.f32 %v2056_v24, %v497_v57  ;;  %v495_v62 = vsub.f32 2.0, %v491_v58  ;;  %v1993_v24 = vld [vmem:[#allocation8 + $0xe4] ss:$16 sps:$4 sm:$0xff]   ;;  %v1970_v57 = vld [vmem:[#allocation8 + $0x28] ss:$16 sps:$4 sm:$0xff]  }
 0x1d7   : > { %v502_v3 = vmul.f32 %v2589_v21, %v498_v1  ;;  %v1979_v21 = vld [vmem:[#allocation8 + $0xa0] ss:$16 sps:$4 sm:$0xff]  }
 0x1d8   : > { %v499_v63 = vmul.f32 %v2066_v56, %v495_v62  ;;  %v504_v0 = vpack.c.bf16 %v501_v60, %v500_v59 }
 0x1da   : > { %1689 = vmatmul.mubr.msk.bf16.vlgmr.msra.gmra.mrb[0].mxu0 %vm447_vm0, %v504_v0  ;;  %v503_v2 = vmul.f32 %v2594_v25, %v499_v63  ;;  %v2620_v25 = vld [vmem:[%s2617_s27] sm:$0xff] }
 0x1db   : > { %566 = vmatprep.mubr.bf16.mxu0 %v2313_v30  ;;  %1034 = vmatpush1.bf16.msra.mxu0 %v1955_v9  ;;  %v2627_v29 = vpack.c.bf16 %v2623_v26, %v2620_v25  ;;  %v2002_v9 = vld [vmem:[#allocation8 + $0xcc] ss:$16 sps:$4 sm:$0xff]  }
 0x1dc   : > { %v505_v4 = vpack.c.bf16 %v503_v2, %v502_v3  ;;  %1035 = vmatprep.subr.bf16.mxu0 %v1960_v11  ;;  %v1976_v2 = vld [vmem:[#allocation8 + $0x48] ss:$16 sps:$4 sm:$0xff]   ;;  %v1984_v3 = vld [vmem:[#allocation8 + $0x6c] ss:$16 sps:$4 sm:$0xff]  }
 0x1dd   : > { %v2008_v11 = vld [vmem:[#allocation8 + $0xec] ss:$16 sps:$4 sm:$0xff]  }
 0x1df   : > { %1036 = vmatpush1.bf16.msra.mxu0 %v1958_v13  ;;  %v2011_v13 = vld [vmem:[#allocation7 + $0x44] ss:$16 sps:$4 sm:$0xff]  }
 0x1e0   : > { %1037 = vmatprep.subr.bf16.mxu0 %v1963_v14  ;;  %v2009_v14 = vld [vmem:[#allocation7 + $0x40] ss:$16 sps:$4 sm:$0xff]  }
 0x1e2   : > { %1690 = vmatmul.mubr.msk.bf16.gmra.mrb[4].mxu0 %vm447_vm0, %v505_v4  ;;  %v1982_v4 = vld [vmem:[#allocation8 + $0x68] ss:$16 sps:$4 sm:$0xff]  }
 0x1e3   : > { %1065 = vmatprep.mubr.bf16.mxu0 %v2313_v30  ;;  %1038 = vmatpush1.bf16.msra.mxu0 %v1961_v15  ;;  %v2014_v15 = vld [vmem:[#allocation7 + $0xc] ss:$16 sps:$4 sm:$0xff]  }
 0x1e4   : > { %1039 = vmatprep.subr.bf16.mxu0 %v1969_v16  ;;  %v2642_v16 = vld [vmem:[#allocation7 + $0x8] ss:$16 sps:$4 sm:$0xff]  }
 0x1e7   : > { %1040 = vmatpush1.bf16.msra.mxu0 %v1967_v17  ;;  %v2017_v17 = vld [vmem:[#allocation7 + $0x64] ss:$16 sps:$4 sm:$0xff]  }
 0x1e8   : > { %1041 = vmatprep.subr.bf16.mxu0 %v1975_v18  ;;  %v2015_v18 = vld [vmem:[#allocation7 + $0x60] ss:$16 sps:$4 sm:$0xff]  }
 0x1eb   : > { %1042 = vmatpush1.bf16.msra.mxu0 %v1973_v19  ;;  %v2645_v19 = vld [vmem:[#allocation7 + $0x2c] ss:$16 sps:$4 sm:$0xff]  }
 0x1ec   : > { %1043 = vmatprep.subr.bf16.mxu0 %v1981_v20  ;;  %v2647_v20 = vld [vmem:[#allocation7 + $0x28] ss:$16 sps:$4 sm:$0xff]  }
 0x1ef   : > { %1044 = vmatpush1.bf16.msra.mxu0 %v1979_v21  ;;  %v2023_v21 = vld [vmem:[#allocation7 + $0x84] ss:$16 sps:$4 sm:$0xff]  }
 0x1f0   : > { %1045 = vmatprep.subr.bf16.mxu0 %v1987_v22  ;;  %v2021_v22 = vld [vmem:[#allocation7 + $0x80] ss:$16 sps:$4 sm:$0xff]  }
 0x1f3   : > { %1046 = vmatpush1.bf16.msra.mxu0 %v1985_v23  ;;  %v2651_v23 = vld [vmem:[#allocation7 + $0x4c] ss:$16 sps:$4 sm:$0xff]  }
 0x1f4   : > { %1047 = vmatprep.subr.bf16.mxu0 %v1993_v24  ;;  %v2653_v24 = vld [vmem:[#allocation7 + $0x48] ss:$16 sps:$4 sm:$0xff]  }
 0x1f7   : > { %1048 = vmatpush1.bf16.msra.mxu0 %v1991_v27  ;;  %v2029_v27 = vld [vmem:[#allocation7 + $0xa4] ss:$16 sps:$4 sm:$0xff]  }
 0x1f8   : > { %1299 = vmatprep.subr.bf16.mxu0 %v1999_v28  ;;  %v2027_v28 = vld [vmem:[#allocation7 + $0xa0] ss:$16 sps:$4 sm:$0xff]  }
 0x1fa   : > { %1066 = vmatmul.mubr.bf16.vlgmr.msra.gmra.mrb[8].mxu0 %v2627_v29 }
 0x1fb   : > { %1300 = vmatpush1.bf16.msra.mxu0 %v1997_v31  ;;  %1075 = vmatprep.mubr.bf16.mxu0 %v2313_v30  ;;  %v2659_v31 = vld [vmem:[#allocation7 + $0x68] ss:$16 sps:$4 sm:$0xff]  }
 0x1fc   : > { %1301 = vmatprep.subr.bf16.mxu0 %v2005_v32  ;;  %v2035_v32 = vld [vmem:[#allocation7 + $0xc4] ss:$16 sps:$4 sm:$0xff]  }
 0x1ff   : > { %1302 = vmatpush1.bf16.msra.mxu0 %v2003_v33  ;;  %v2664_v33 = vld [vmem:[%s2617_s27 + $0x10] sm:$0xff] }
 0x200   : > { %1303 = vmatprep.subr.bf16.mxu0 %v2011_v13 }
 0x203   : > { %1304 = vmatpush1.bf16.msra.mxu0 %v2009_v14 }
 0x204   : > { %1305 = vmatprep.subr.bf16.mxu0 %v2017_v17 }
 0x207   : > { %1306 = vmatpush1.bf16.msra.mxu0 %v2015_v18 }
 0x208   : > { %1307 = vmatprep.subr.bf16.mxu0 %v2023_v21 }
 0x20b   : > { %1308 = vmatpush1.bf16.msra.mxu0 %v2021_v22 }
 0x20c   : > { %1309 = vmatprep.subr.bf16.mxu0 %v2029_v27 }
 0x20f   : > { %1310 = vmatpush1.bf16.msra.mxu0 %v2027_v28 }
 0x210   : > { %1311 = vmatprep.subr.bf16.mxu0 %v2035_v32 }
 0x2ad   : > { %v558_v34 = vpop.f32.mrb[0].mxu0 }
 0x2ae   : > { %v560_v37 = vpop.f32.mrb[1].mxu0  ;;  %v585_v41 = vmul.f32 %v577_v35, %v558_v34  ;;  %v2667_v34 = vld [vmem:[%s2617_s27 + $0x18] sm:$0xff]  ;;  %v2033_v35 = vld [vmem:[#allocation7 + $0xc0] ss:$16 sps:$4 sm:$0xff]   ;;  %s2233_s27 = sshll.u32 %s2314_s20, 4  ;;  %s2234_s27 = int_to_ptr.vmem [resolvable:$false] %s2233_s27 }
 0x2af   : > { %v562_v40 = vpop.f32.mrb[2].mxu0  ;;  %v586_v44 = vmul.f32 %v578_v38, %v560_v37  ;;  %v2671_v37 = vld [vmem:[#allocation7 + $0x8c] ss:$16 sps:$4 sm:$0xff]   ;;  %v2673_v38 = vld [vmem:[#allocation7 + $0x88] ss:$16 sps:$4 sm:$0xff]   ;;  %1312 = vmatpush1.bf16.msra.mxu0 %v2033_v35  ;;  %s2235_s29 = scalar_lea.vmem %s2234_s27, 1024  ;;  %p2236_p7 = scmp.lt.s32.totalorder %s2755_s25, %s2234_s27 }
 0x2b0   : > { %v587_v42 = vmul.f32 %v579_v36, %v562_v40  ;;  %v564_v43 = vpop.f32.mrb[3].mxu0  ;;  %v840_v36 = vpack.c.bf16 %v2667_v34, %v2664_v33  ;;  %v2039_v40 = vld [vmem:[#allocation7 + $0xe0] ss:$16 sps:$4 sm:$0xff]   ;;  %p2237_p9 = scmp.lt.s32.totalorder %s2235_s29, %s2229_s19 }
 0x2b1   : > { %v588_v45 = vmul.f32 %v580_v39, %v564_v43  ;;  %v2041_v39 = vld [vmem:[#allocation7 + $0xe4] ss:$16 sps:$4 sm:$0xff]   ;;  %v2685_v43 = vld [vmem:[#allocation7 + $0xcc] ss:$16 sps:$4 sm:$0xff]  }
 0x2b2   : > { %v593_v46 = vpack.c.bf16 %v587_v42, %v585_v41  ;;  %1076 = vmatmul.mubr.bf16.gmra.mrb[12].mxu0 %v840_v36  ;;  %v2677_v41 = vld [vmem:[#allocation7 + $0xac] ss:$16 sps:$4 sm:$0xff]   ;;  %1313 = vmatprep.subr.bf16.mxu0 %v2041_v39  ;;  %v2680_v42 = vld [vmem:[#allocation7 + $0xa8] ss:$16 sps:$4 sm:$0xff]   ;;  %p2238_p12 = por %p2237_p9, %p2236_p7 }
 0x2b3   : > { %v594_v47 = vpack.c.bf16 %v588_v45, %v586_v44  ;;  %1331 = vmatprep.mubr.bf16.mxu0 %v2313_v30  ;;  %1314 = vmatpush1.bf16.msra.mxu0 %v2039_v40  ;;  %v2687_v44 = vld [vmem:[#allocation7 + $0xc8] ss:$16 sps:$4 sm:$0xff]   ;;  %v2691_v45 = vld [vmem:[#allocation7 + $0xec] ss:$16 sps:$4 sm:$0xff]  }
 0x2b4   : > { %1352 = vmatprep.subr.bf16.mxu0 %v2014_v15  ;;  %p2239_p0 = pnand %p2238_p12, %p2232_p3 }
 0x2b5   : > { %v568_v50 = vpop.f32.mrb[4].mxu0  ;;  %764 = vmatprep.mubr.bf16.mxu1 %v594_v47 }
 0x2b6   : > { %v570_v53 = vpop.f32.mrb[5].mxu0  ;;  %765 = vmatmul.mubr.bf16.vlgmr.msra.gmra.mrb[0].mxu1 %v593_v46  ;;  %v589_v58 = vmul.f32 %v581_v51, %v568_v50  ;;  %v2693_v46 = vld [vmem:[#allocation7 + $0xe8] ss:$16 sps:$4 sm:$0xff]  }
 0x2b7   : > { %v572_v56 = vpop.f32.mrb[6].mxu0  ;;  %1087 = vmatpush1.bf16.msra.mxu1 %v1964_v48  ;;  %v590_v62 = vmul.f32 %v582_v54, %v570_v53  ;;  %v1691_v48 = vld [vmem:[%s2803_s5] ss:$0 sm:$0xff] }
 0x2b8   : > { %v591_v59 = vmul.f32 %v583_v52, %v572_v56  ;;  %v574_v60 = vpop.f32.mrb[7].mxu0  ;;  %1088 = vmatprep.subr.bf16.mxu1 %v1972_v49 }
 0x2b9   : > { %v592_v63 = vmul.f32 %v584_v55, %v574_v60 }
 0x2ba   : > { %v595_v0 = vpack.c.bf16 %v591_v59, %v589_v58 }
 0x2bb   : > { %v596_v1 = vpack.c.bf16 %v592_v63, %v590_v62  ;;  %1089 = vmatpush1.bf16.msra.mxu1 %v1970_v57 }
 0x2bc   : > { %1090 = vmatprep.subr.bf16.mxu1 %v1978_v61 }
 0x2bd   : > { %772 = vmatprep.mubr.bf16.mxu1 %v596_v1 }
 0x2be   : > { %773 = vmatmul.mubr.bf16.gmra.mrb[4].mxu1 %v595_v0 }
 0x2bf   : > { %1091 = vmatpush1.bf16.msra.mxu1 %v1976_v2  ;;  %1118 = vmatprep.mubr.bf16.mxu1 %v2313_v30 }
 0x2c0   : > { %1092 = vmatprep.subr.bf16.mxu1 %v1984_v3 }
 0x2c3   : > { %1093 = vmatpush1.bf16.msra.mxu1 %v1982_v4 }
 0x2c4   : > { %1094 = vmatprep.subr.bf16.mxu1 %v1990_v5 }
 0x2c7   : > { %1095 = vmatpush1.bf16.msra.mxu1 %v1988_v6 }
 0x2c8   : > { %1096 = vmatprep.subr.bf16.mxu1 %v1996_v7 }
 0x2cb   : > { %1097 = vmatpush1.bf16.msra.mxu1 %v1994_v8 }
 0x2cc   : > { %1098 = vmatprep.subr.bf16.mxu1 %v2002_v9 }
 0x2cf   : > { %1099 = vmatpush1.bf16.msra.mxu1 %v2000_v10 }
 0x2d0   : > { %1100 = vmatprep.subr.bf16.mxu1 %v2008_v11 }
 0x2d3   : > { %1101 = vmatpush1.bf16.msra.mxu1 %v2006_v12 }
 0x2d4   : > { %1820 = vmatprep.subr.bf16.mxu1 %v2014_v15 }
 0x2d6   : > { %1119 = vmatmul.mubr.bf16.vlgmr.msra.gmra.mrb[8].mxu1 %v2627_v29  ;;  %v2657_v29 = vld [vmem:[#allocation7 + $0x6c] ss:$16 sps:$4 sm:$0xff]  }
 0x2d7   : > { %1128 = vmatprep.mubr.bf16.mxu1 %v2313_v30  ;;  %1828 = vmatpush1.bf16.msra.mxu1 %v2642_v16 }
 0x2d8   : > { %1821 = vmatprep.subr.bf16.mxu1 %v2645_v19 }
 0x2db   : > { %1829 = vmatpush1.bf16.msra.mxu1 %v2647_v20 }
 0x2dc   : > { %1822 = vmatprep.subr.bf16.mxu1 %v2651_v23 }
 0x2de   : > { %1129 = vmatmul.mubr.bf16.gmra.mrb[12].mxu1 %v840_v36 }
 0x2df   : > { %1830 = vmatpush1.bf16.msra.mxu1 %v2653_v24  ;;  %1394 = vmatprep.mubr.bf16.mxu1 %v2313_v30 }
 0x2e0   : > { %1823 = vmatprep.subr.bf16.mxu1 %v2657_v29 }
 0x2e3   : > { %1831 = vmatpush1.bf16.msra.mxu1 %v2659_v31 }
 0x2e4   : > { %1824 = vmatprep.subr.bf16.mxu1 %v2671_v37 }
 0x2e7   : > { %1832 = vmatpush1.bf16.msra.mxu1 %v2673_v38 }
 0x2e8   : > { %1825 = vmatprep.subr.bf16.mxu1 %v2677_v41 }
 0x2eb   : > { %1833 = vmatpush1.bf16.msra.mxu1 %v2680_v42 }
 0x2ec   : > { %1826 = vmatprep.subr.bf16.mxu1 %v2685_v43 }
 0x2ef   : > { %1834 = vmatpush1.bf16.msra.mxu1 %v2687_v44 }
 0x2f0   : > { %1827 = vmatprep.subr.bf16.mxu1 %v2691_v45 }
 0x2f3   : > { %1835 = vmatpush1.bf16.msra.mxu1 %v2693_v46 }
 0x389   : > { %v1808_v47 = vpop.f32.mrb[0].mxu1 }
 0x38a   : > { %v1809_v49 = vpop.f32.mrb[1].mxu1 }
 0x38b   : > { %v1810_v50 = vadd.f32 %v1809_v49, %v1808_v47  ;;  %v1811_v51 = vpop.f32.mrb[2].mxu1 }
 0x38c   : > { %v1812_v52 = vpop.f32.mrb[3].mxu1 }
 0x38d   : > { %v767_v53 = vadd.f32 %v1810_v50, %v1691_v48  ;;  %v1813_v54 = vadd.f32 %v1812_v52, %v1811_v51 }
 0x38f   : > { %v785_v55 = vmul.f32 1.442695, %v767_v53  ;;  %v770_v56 = vadd.f32 %v1813_v54, %v1691_v48  ;;  %vm781_vm1 = vcmp.gt.f32.partialorder %v767_v53, 0.0 }
 0x391   : > { %2067 = vpow2.f32 %v785_v55  ;;  %v787_v57 = vmul.f32 1.442695, %v770_v56  ;;  %v1814_v58 = vpop.f32.mrb[4].mxu1  ;;  %vm782_vm2 = vcmp.gt.f32.partialorder %v770_v56, 0.0 }
 0x392   : > { %v1815_v59 = vpop.f32.mrb[5].mxu1 }
 0x393   : > { %2069 = vpow2.f32 %v787_v57  ;;  %v1816_v60 = vadd.f32 %v1815_v59, %v1814_v58  ;;  %v1817_v61 = vpop.f32.mrb[6].mxu1 }
 0x394   : > { %v1818_v62 = vpop.f32.mrb[7].mxu1 }
 0x395   : > { %v775_v63 = vadd.f32 %v1816_v60, %v1691_v48  ;;  %v1819_v0 = vadd.f32 %v1818_v62, %v1817_v61 }
 0x397   : > { %v789_v1 = vmul.f32 1.442695, %v775_v63  ;;  %v778_v2 = vadd.f32 %v1819_v0, %v1691_v48  ;;  %vm783_vm3 = vcmp.gt.f32.partialorder %v775_v63, 0.0 }
 0x399   : > { %2071 = vpow2.f32 %v789_v1  ;;  %v791_v3 = vmul.f32 1.442695, %v778_v2  ;;  %vm784_vm4 = vcmp.gt.f32.partialorder %v778_v2, 0.0 }
 0x39b   : > { %v2068_v4 = vpop.eup %2067  ;;  %2073 = vpow2.f32 %v791_v3 }
 0x39c   : > { %v1708_v5 = vadd.f32 -1.0, %v2068_v4 }
 0x39d   : > { %v2070_v6 = vpop.eup %2069 }
 0x39e   : > { %v1709_v7 = vadd.f32 -1.0, %v2070_v6  ;;  %v797_v8 = vsel %vm781_vm1, %v767_v53, %v1708_v5 }
 0x3a0   : > { %v798_v9 = vsel %vm782_vm2, %v770_v56, %v1709_v7 }
 0x3a1   : > { %v805_v10 = vpack.c.bf16 %v798_v9, %v797_v8 }
 0x3a3   : > { %v2072_v11 = vpop.eup %2071  ;;  %1332 = vmatmul.mubr.bf16.vlgmr.msra.gmra.mrb[8].mxu0 %v805_v10 }
 0x3a4   : > { %1353 = vmatpush1.bf16.msra.mxu0 %v2642_v16  ;;  %1341 = vmatprep.mubr.bf16.mxu0 %v2313_v30  ;;  %v1710_v12 = vadd.f32 -1.0, %v2072_v11 }
 0x3a5   : > { %v2074_v13 = vpop.eup %2073  ;;  %1354 = vmatprep.subr.bf16.mxu0 %v2645_v19  ;;  %v1407_v19 = vlaneseq }
 0x3a6   : > { %v1711_v14 = vadd.f32 -1.0, %v2074_v13  ;;  %v799_v15 = vsel %vm783_vm3, %v775_v63, %v1710_v12 }
 0x3a8   : > { %1355 = vmatpush1.bf16.msra.mxu0 %v2647_v20  ;;  %v800_v17 = vsel %vm784_vm4, %v778_v2, %v1711_v14  ;;  %v2725_v20 = vshrl.u32 %v1407_v19, 7 }
 0x3a9   : > { %1356 = vmatprep.subr.bf16.mxu0 %v2651_v23  ;;  %v806_v18 = vpack.c.bf16 %v800_v17, %v799_v15  ;;  %v2705_v21 = vpop.f32.mrb[8].mxu1 }
 0x3aa   : > { %v2707_v22 = vpop.f32.mrb[9].mxu1  ;;  %v1409_v23 = vsub.s32 0, %v2725_v20  ;;  %v1421_v5 = vsub.s32 3, %v2725_v20  ;;  %v1417_v6 = vsub.s32 2, %v2725_v20 }
 0x3ab   : > { %1342 = vmatmul.mubr.bf16.gmra.mrb[12].mxu0 %v806_v18  ;;  %1395 = vmatmul.mubr.bf16.vlgmr.msra.gmra.mrb[12].mxu1 %v806_v18 }
 0x3ac   : > { %1357 = vmatpush1.bf16.msra.mxu0 %v2653_v24  ;;  %1384 = vmatprep.mubr.bf16.mxu0 %v2313_v30  ;;  %v2721_v30 = vpop.f32.mrb[10].mxu1  ;;  %v1405_v24 = vld [vmem:[%s2806_s8] sm:$0xf] }
 0x3ad   : > { %1358 = vmatprep.subr.bf16.mxu0 %v2657_v29  ;;  %v2723_v16 = vpop.f32.mrb[11].mxu1  ;;  %v1410_v27 = vrot.slane %v1405_v24, %v1409_v23  ;;  %v1422_v9 = vrot.slane %v1405_v24, %v1421_v5  ;;  %v1418_v13 = vrot.slane %v1405_v24, %v1417_v6 }
 0x3b0   : > { %1359 = vmatpush1.bf16.msra.mxu0 %v2659_v31 }
 0x3b1   : > { %1360 = vmatprep.subr.bf16.mxu0 %v2671_v37  ;;  %v1413_v37 = vsub.s32 1, %v2725_v20 }
 0x3b4   : > { %1361 = vmatpush1.bf16.msra.mxu0 %v2673_v38 }
 0x3b5   : > { %1362 = vmatprep.subr.bf16.mxu0 %v2677_v41 }
 0x3b8   : > { %1363 = vmatpush1.bf16.msra.mxu0 %v2680_v42  ;;  %v1414_v42 = vrot.slane %v1405_v24, %v1413_v37 }
 0x3b9   : > { %1364 = vmatprep.subr.bf16.mxu0 %v2685_v43 }
 0x3bc   : > { %1365 = vmatpush1.bf16.msra.mxu0 %v2687_v44 }
 0x3bd   : > { %1366 = vmatprep.subr.bf16.mxu0 %v2691_v45 }
 0x3c0   : > { %1367 = vmatpush1.bf16.msra.mxu0 %v2693_v46 }
 0x3c3   : > { %1385 = vmatmul.mubr.bf16.vlgmr.msra.gmra.mrb[16].mxu0 %v805_v10 }
 0x476   : > { %v1333_v28 = vpop.f32.mrb[8].mxu0 }
 0x477   : > { %v1335_v29 = vpop.f32.mrb[9].mxu0  ;;  %v1427_v31 = vadd.f32 %v1410_v27, %v1333_v28 }
 0x478   : > { %v1337_v32 = vpop.f32.mrb[10].mxu0  ;;  %v1428_v53 = vadd.f32 %v1414_v42, %v1335_v29 }
 0x479   : > { %v1339_v35 = vpop.f32.mrb[11].mxu0  ;;  %v1431_v36 = vadd.f32 %v1410_v27, %v1337_v32  ;;  %v1776_v38 = vmul.f32 -1.442695, %v1427_v31 }
 0x47a   : > { %v1432_v56 = vadd.f32 %v1414_v42, %v1339_v35  ;;  %v1780_v58 = vmul.f32 -1.442695, %v1428_v53 }
 0x47b   : > { %v1777_v39 = vmul.f32 -1.442695, %v1431_v36  ;;  %2075 = vpow2.f32 %v1776_v38 }
 0x47c   : > { %v1781_v60 = vmul.f32 -1.442695, %v1432_v56 }
 0x47d   : > { %2077 = vpow2.f32 %v1777_v39 }
 0x47e   : > { %v1343_v40 = vpop.f32.mrb[12].mxu0  ;;  %v2732_v41 = vpop.f32.mrb[12].mxu1 }
 0x47f   : > { %v1435_v43 = vadd.f32 %v1410_v27, %v1343_v40  ;;  %v1345_v44 = vpop.f32.mrb[13].mxu0  ;;  %v1398_v45 = vpop.f32.mrb[13].mxu1  ;;  %v1437_v24 = vadd.f32 %v1418_v13, %v2732_v41 }
 0x480   : > { %v1347_v46 = vpop.f32.mrb[14].mxu0  ;;  %v2734_v47 = vpop.f32.mrb[14].mxu1  ;;  %v1436_v52 = vadd.f32 %v1414_v42, %v1345_v44 }
 0x481   : > { %v1778_v48 = vmul.f32 -1.442695, %v1435_v43  ;;  %v1439_v49 = vadd.f32 %v1410_v27, %v1347_v46  ;;  %v1349_v50 = vpop.f32.mrb[15].mxu0  ;;  %v1402_v51 = vpop.f32.mrb[15].mxu1  ;;  %v1438_v27 = vadd.f32 %v1422_v9, %v1398_v45 }
 0x482   : > { %v1440_v55 = vadd.f32 %v1414_v42, %v1349_v50  ;;  %v1782_v57 = vmul.f32 -1.442695, %v1436_v52  ;;  %v1442_v38 = vadd.f32 %v1422_v9, %v1402_v51 }
 0x483   : > { %2079 = vpow2.f32 %v1778_v48  ;;  %v1779_v54 = vmul.f32 -1.442695, %v1439_v49 }
 0x484   : > { %v1783_v59 = vmul.f32 -1.442695, %v1440_v55 }
 0x485   : > { %2081 = vpow2.f32 %v1779_v54  ;;  %v2076_v61 = vpop.eup %2075 }
 0x486   : > { %2083 = vpow2.f32 %v1782_v57  ;;  %v1455_v0 = vadd.f32 1.0, %v2076_v61 }
 0x487   : > { %2085 = vpow2.f32 %v1780_v58  ;;  %v2078_v62 = vpop.eup %2077 }
 0x488   : > { %2087 = vpow2.f32 %v1783_v59  ;;  %v1456_v3 = vadd.f32 1.0, %v2078_v62 }
 0x489   : > { %2089 = vpow2.f32 %v1781_v60 }
 0x48d   : > { %v2080_v63 = vpop.eup %2079 }
 0x48e   : > { %v1457_v1 = vadd.f32 1.0, %v2080_v63 }
 0x48f   : > { %v2082_v2 = vpop.eup %2081 }
 0x490   : > { %2091 = vrcp.f32 %v1457_v1  ;;  %v1458_v4 = vadd.f32 1.0, %v2082_v2  ;;  %v2084_v7 = vpop.eup %2083 }
 0x491   : > { %2093 = vrcp.f32 %v1455_v0  ;;  %v2086_v8 = vpop.eup %2085  ;;  %v1481_v14 = vadd.f32 1.0, %v2084_v7 }
 0x492   : > { %2095 = vrcp.f32 %v1458_v4  ;;  %v2088_v10 = vpop.eup %2087  ;;  %v1479_v18 = vadd.f32 1.0, %v2086_v8 }
 0x493   : > { %2097 = vrcp.f32 %v1456_v3  ;;  %v2090_v12 = vpop.eup %2089  ;;  %v1482_v28 = vadd.f32 1.0, %v2088_v10 }
 0x494   : > { %v1480_v32 = vadd.f32 1.0, %v2090_v12  ;;  %2099 = vrcp.f32 %v1481_v14 }
 0x495   : > { %2101 = vrcp.f32 %v1479_v18 }
 0x496   : > { %v1386_v11 = vpop.f32.mrb[16].mxu0  ;;  %2103 = vrcp.f32 %v1482_v28 }
 0x497   : > { %v1387_v15 = vadd.f32 %v1386_v11, %v2705_v21  ;;  %v1388_v17 = vpop.f32.mrb[17].mxu0  ;;  %2105 = vrcp.f32 %v1480_v32 }
 0x498   : > { %v1389_v19 = vadd.f32 %v1388_v17, %v2707_v22  ;;  %v1390_v23 = vpop.f32.mrb[18].mxu0 }
 0x499   : > { %v1391_v29 = vadd.f32 %v1390_v23, %v2721_v30  ;;  %v1392_v20 = vpop.f32.mrb[19].mxu0  ;;  %v1429_v22 = vadd.f32 %v1418_v13, %v1387_v15  ;;  %v1441_v30 = vadd.f32 %v1418_v13, %v2734_v47 }
 0x49a   : > { %v2092_v31 = vpop.eup %2091  ;;  %v1430_v35 = vadd.f32 %v1422_v9, %v1389_v19  ;;  %v1393_v36 = vadd.f32 %v1392_v20, %v2723_v16 }
 0x49b   : > { %v2094_v37 = vpop.eup %2093  ;;  %v1493_v21 = vmul.f32 %v2092_v31, %v1438_v27  ;;  %v1433_v46 = vadd.f32 %v1418_v13, %v1391_v29 }
 0x49c   : > { %v2096_v39 = vpop.eup %2095  ;;  %v1491_v40 = vmul.f32 %v2094_v37, %v1430_v35  ;;  %v1434_v42 = vadd.f32 %v1422_v9, %v1393_v36 }
 0x49d   : > { %v2098_v43 = vpop.eup %2097  ;;  %v1497_v44 = vadd.f32 %v1493_v21, %v1437_v24  ;;  %v1494_v45 = vmul.f32 %v2096_v39, %v1442_v38 }
 0x49e   : > { %v1495_v16 = vadd.f32 %v1491_v40, %v1429_v22  ;;  %v1492_v48 = vmul.f32 %v2098_v43, %v1434_v42  ;;  %v2100_v50 = vpop.eup %2099 }
 0x49f   : > { %2107 = vtanh.f32 %v1497_v44  ;;  %v1498_v41 = vadd.f32 %v1494_v45, %v1441_v30  ;;  %v2102_v51 = vpop.eup %2101  ;;  %v1505_v54 = vsub.f32 1.0, %v2100_v50  ;;  %v1513_v57 = vmul.f32 %v2100_v50, %v2664_v33 }
 0x4a0   : > { %2109 = vtanh.f32 %v1495_v16  ;;  %v1496_v49 = vadd.f32 %v1492_v48, %v1433_v46  ;;  %v2104_v52 = vpop.eup %2103  ;;  %v1503_v55 = vsub.f32 1.0, %v2102_v51  ;;  %v1511_v61 = vmul.f32 %v2102_v51, %v2620_v25 }
 0x4a1   : > { %2111 = vtanh.f32 %v1498_v41  ;;  %v2106_v53 = vpop.eup %2105  ;;  %v1506_v59 = vsub.f32 1.0, %v2104_v52  ;;  %v1514_v2 = vmul.f32 %v2104_v52, %v2667_v34 }
 0x4a2   : > { %2113 = vtanh.f32 %v1496_v49  ;;  %v1504_v62 = vsub.f32 1.0, %v2106_v53  ;;  %v1512_v4 = vmul.f32 %v2106_v53, %v2623_v26 }
 0x4a9   : > { %v2108_v47 = vpop.eup %2107 }
 0x4aa   : > { %v2110_v56 = vpop.eup %2109  ;;  %v1509_v58 = vmul.f32 %v2108_v47, %v1505_v54 }
 0x4ab   : > { %v2112_v60 = vpop.eup %2111  ;;  %v1507_v63 = vmul.f32 %v2110_v56, %v1503_v55 }
 0x4ac   : > { %v2114_v0 = vpop.eup %2113  ;;  %v1517_v1 = vadd.f32 %v1513_v57, %v1509_v58  ;;  %v1510_v3 = vmul.f32 %v2112_v60, %v1506_v59 }
 0x4ad   : > { %v1515_v5 = vadd.f32 %v1511_v61, %v1507_v63  ;;  %v1508_v6 = vmul.f32 %v2114_v0, %v1504_v62 }
 0x4ae   : > { %v1521_v33 = vmax.f32 %v1517_v1, 0.0  ;;  %v1518_v7 = vadd.f32 %v1514_v2, %v1510_v3 }
 0x4af   : > { %v1519_v8 = vmax.f32 %v1515_v5, 0.0  ;;  %v1516_v25 = vadd.f32 %v1512_v4, %v1508_v6 }
 0x4b0   : > { %1525 = vst [vmem:[%s427_s30 + $0x10] sm:$0xff] %v1521_v33  ;;  %v1522_v9 = vmax.f32 %v1518_v7, 0.0 }
 0x4b1   : > { %1523 = vst [vmem:[%s427_s30] sm:$0xff] %v1519_v8  ;;  %v1520_v26 = vmax.f32 %v1516_v25, 0.0 }
 0x4b2   : > { %1526 = vst [vmem:[%s427_s30 + $0x18] sm:$0xff] %v1522_v9 }
 0x4b3   : > { %1524 = vst [vmem:[%s427_s30 + $0x8] sm:$0xff] %v1520_v26 }
 0x4b4   : > { %2242 = shalt.err (!%p2239_p0)
}
 0x4b5   : > { %s2243_s14 = scalar_lea.hbm %s2753_s24, 512  ;;  %s2247_s15 = scalar_lea.hbm %s2833_s9, 4096 }
 0x4b6   : > { %p2244_p5 = scmp.ne.s32.totalorder %s2753_s24, %s2243_s14  ;;  %p2248_p1 = scmp.lt.u32.totalorder %s2753_s24, %s2833_s9 }
 0x4b7   : > { %p2249_p2 = scmp.lt.u32.totalorder %s2247_s15, %s2243_s14  ;;  %p2251_p6 = scmp.lt.u32.totalorder %s2243_s14, %s2753_s24 }
 0x4b8   : > { %p2245_p10 = pnand %p2244_p5, %p2507_p8 }
 0x4b9   : > { %p2250_p4 = por %p2249_p2, %p2248_p1 }
 0x4ba   : > { %p2246_p11 = pneg %p2245_p10 }
 0x4bb   : > { %p2252_p13 = por %p2251_p6, %p2250_p4 }
 0x4bd   : > { %p2253_p3 = pnand %p2252_p13, %p2246_p11 }
 0x4bf   : > { %2256 = shalt.err (!%p2253_p3)
}
 0x4c0   : > { %s2315_s22 = smov 128   ;;  %s2316_s4 = smov 8  }
 0x4c1   : > { %1866 = dma.vmem_to_hbm [thread:$0]  (%p2507_p8), %s2755_s25, 512, %s2753_s24, %s1528_s13, %s2315_s22, %s2315_s22, %s2316_s4  }
 0x4c2 PF: > { %s2834_s19 = sld [smem:[#allocation15_spill]]  ;;  %s2835_s20 = sld [smem:[#allocation16_spill]] }
 0x4c3   : > { %p1893_p7 = scmp.ge.s32.totalorder %s2303_s12, 2 }
 0x4c8   : > { %s1556_s27 = sand.u32 1, %s2834_s19   ;;  %p2836_p9 = scmp.ne.s32.totalorder %s2835_s20, 0 }
 0x4c9   : > { %s1557_s29 = scalar_lea.sflag [#allocation4], %s1556_s27 }
 0x4ca   : > { %p1883_p12 = pnand %p1893_p7, %p2836_p9 }
 0x4cc   : > { %2286 = dma.done.wait (!%p1883_p12), %s1557_s29, 512  }
 0x4cd   : > { %2288 = vsyncadd (!%p1883_p12), %s1557_s29, 4294966784  ;;  %p24_p0 = scmp.ge.s32.totalorder %s2472_s26, 10   ;;  %s2837_s30 = smov %s2295_s10 }
 0x4ce   : > { %s2838_s10 = smov %s2299_s11  ;;  %s2839_s11 = smov %s2503_s21 }
 0x4cf   : > { %s2840_s12 = smov %s2472_s26  ;;  %26 = sbr.rel (!%p24_p0) target bundleno = 10 (0xa), region = 119 }
 0x4d6   :  { %1562 = vsyncpa [#allocation3], 1 }
 0x4d7   :  { %1564 = vsyncpa [#allocation3 + $0x1], 1 }
 0x4d8   :  { %1565 = vsyncpa [#allocation6], 1 }
 0x4d9   :  { %1566 = vsyncpa [#allocation9], 1 }
 0x4da   :  { %1567 = vsyncpa [#allocation4], 1 }
 0x4db   :  { %1569 = vsyncpa [#allocation4 + $0x1], 1 }

</bundles_post_ra>
